<compile_context>
chip_gen: v7x
topology: tpu7x:2x2x1
jax: 0.10.0
libtpu: 0.0.40
codegen_flags: <defaults>
</compile_context>

<pallas_src>
import functools
import math

import jax
import jax.numpy as jnp
from jax.experimental import pallas as pl
from jax.experimental.pallas import tpu as pltpu

_MIB = 1024 * 1024


def _round_up(x, m):
    return (x + m - 1) // m * m


def _cdiv(a, b):
    return -(-a // b)


def _tpu_vmem_capacity_bytes():
    """Per-TensorCore VMEM capacity (bytes), with safe fallbacks."""
    try:
        cap = getattr(pltpu.get_tpu_info(), "vmem_capacity_bytes", None)
        if cap:
            return int(cap)
    except Exception:
        pass
    try:
        kind = jax.devices()[0].device_kind.lower()
    except Exception:
        kind = ""
    if "v7" in kind:
        return 64 * _MIB
    return 128 * _MIB


def _num_tensorcores_per_chip():
    """v7x has 2 TensorCores per chip; v5e/v6e have 1."""
    try:
        kind = jax.devices()[0].device_kind.lower()
        if "v7" in kind:
            return 2
    except Exception:
        pass
    return 1


# ----------------------------------------------------------------------------
# Kernel
# ----------------------------------------------------------------------------
def _ffn_kernel(x_ref, w1_ref, b1_ref, w2_ref, b2_ref, o_ref, *scratch,
                single_step):
    # x_ref : (TM, DM)    input row tile
    # w1_ref: (DM, TK)    W1 column tile (d_ff chunk)
    # b1_ref: (1,  TK)
    # w2_ref: (TK, DM)    W2 row tile (d_ff chunk)
    # b2_ref: (1,  DM)
    # o_ref : (TM, DM)    resident across the k (d_ff) reduction axis
    # scratch: optional (TM, DM) f32 accumulator (only for non-f32 outputs)
    h = jnp.dot(x_ref[...], w1_ref[...], preferred_element_type=jnp.float32)
    h = jnp.maximum(h + b1_ref[...], 0.0)            # bias + ReLU per chunk
    y_part = jnp.dot(h.astype(w2_ref.dtype), w2_ref[...],
                     preferred_element_type=jnp.float32)

    if single_step:
        # Single d_ff chunk: write the output in one shot (no accumulator).
        o_ref[...] = (y_part + b2_ref[...]).astype(o_ref.dtype)
        return

    acc_ref = scratch[0] if scratch else o_ref       # f32 out -> accumulate in-place
    k = pl.program_id(1)

    @pl.when(k == 0)
    def _init():
        acc_ref[...] = y_part.astype(acc_ref.dtype)

    @pl.when(k > 0)
    def _accumulate():
        acc_ref[...] += y_part.astype(acc_ref.dtype)

    @pl.when(k == pl.num_programs(1) - 1)
    def _finalize():
        o_ref[...] = (acc_ref[...] + b2_ref[...]).astype(o_ref.dtype)


# ----------------------------------------------------------------------------
# Wrapper
# ----------------------------------------------------------------------------
def _prep_weights(w1, b1, w2, b2, compute_dtype, block_ff):
    """One-time cast + lane-padding of the weights (hoisted out of per-call)."""
    d_model, d_ff = w1.shape
    cdt = jnp.dtype(compute_dtype)
    dm_pad = _round_up(d_model, 128)
    tk = min(_round_up(block_ff, 128), _round_up(d_ff, 128))
    dff_pad = _round_up(d_ff, tk)

    w1p = jnp.asarray(w1, cdt)
    w2p = jnp.asarray(w2, cdt)
    if (dm_pad, dff_pad) != (d_model, d_ff):
        w1p = jnp.pad(w1p, ((0, dm_pad - d_model), (0, dff_pad - d_ff)))
        w2p = jnp.pad(w2p, ((0, dff_pad - d_ff), (0, dm_pad - d_model)))

    b1p = jnp.asarray(b1, jnp.float32)
    b2p = jnp.asarray(b2, jnp.float32)
    if dff_pad != d_ff:
        b1p = jnp.pad(b1p, (0, dff_pad - d_ff))
    if dm_pad != d_model:
        b2p = jnp.pad(b2p, (0, dm_pad - d_model))
    return (w1p, b1p.reshape(1, dff_pad), w2p, b2p.reshape(1, dm_pad)), tk


@functools.partial(jax.jit, static_argnames=("d_model", "tk", "block_rows",
                                             "min_row_tiles", "vmem_cap"))
def _ffn_core(x, w1p, b1p, w2p, b2p, *, d_model, tk, block_rows,
              min_row_tiles, vmem_cap):
    assert x.shape[-1] == d_model
    n = math.prod(x.shape[:-1])
    dm_pad, dff_pad = w1p.shape
    cdt = w1p.dtype
    out_dtype = x.dtype
    cb = jnp.dtype(cdt).itemsize
    ob = jnp.dtype(out_dtype).itemsize

    # Sublane packing multiple for the compute dtype (bf16 -> 16, f32 -> 8).
    sublane = max(8, 32 // cb)

    # ---- balanced row tiles (no full-block padding for awkward N) ----------
    num_row_tiles = max(_cdiv(n, block_rows), min_row_tiles)
    num_row_tiles = min(num_row_tiles, max(1, _cdiv(n, sublane)))
    tm = _round_up(_cdiv(n, num_row_tiles), sublane)
    n_pad = num_row_tiles * tm

    # ---- accurate, generation-aware VMEM budget -----------------------------
    acc_in_out = (out_dtype == jnp.float32)

    def _est(tm_, tk_):
        return (2 * tm_ * dm_pad * cb            # x tiles (double-buffered)
                + 2 * dm_pad * tk_ * cb          # W1 tiles
                + 2 * tk_ * 4                    # b1 tiles (f32)
                + 2 * tk_ * dm_pad * cb          # W2 tiles
                + 2 * dm_pad * 4                 # b2 tile
                + 2 * tm_ * dm_pad * ob          # out tiles
                + (0 if acc_in_out else tm_ * dm_pad * 4)  # f32 accumulator
                + tm_ * tk_ * 4)                 # h intermediate (f32)

    budget = int(0.8 * vmem_cap)
    tk_eff = tk
    # Shrink d_ff tile first (halving keeps tk_eff | dff_pad and % 128 == 0).
    while _est(tm, tk_eff) > budget and tk_eff % 256 == 0:
        tk_eff //= 2
    # Then shrink the row tile.
    while _est(tm, tk_eff) > budget and tm > sublane:
        tm = _round_up(max(sublane, tm // 2), sublane)
        num_row_tiles = _cdiv(n, tm)
        n_pad = num_row_tiles * tm

    grid = (n_pad // tm, dff_pad // tk_eff)
    single_step = grid[1] == 1
    use_scratch = (not acc_in_out) and (not single_step)

    vmem_limit = int(min(vmem_cap, max(32 * _MIB, _est(tm, tk_eff) + 8 * _MIB)))

    # ---- pad + cast activations (weights already prepared) ------------------
    x2d = x.reshape(n, d_model)
    if x2d.dtype != cdt:
        x2d = x2d.astype(cdt)
    if (n_pad, dm_pad) != (n, d_model):
        x2d = jnp.pad(x2d, ((0, n_pad - n), (0, dm_pad - d_model)))

    kernel = functools.partial(_ffn_kernel, single_step=single_step)

    out2d = pl.pallas_call(
        kernel,
        out_shape=jax.ShapeDtypeStruct((n_pad, dm_pad), out_dtype),
        grid_spec=pltpu.PrefetchScalarGridSpec(
            num_scalar_prefetch=0,
            grid=grid,
            in_specs=[
                pl.BlockSpec((tm, dm_pad), lambda i, k: (i, 0)),      # x rows
                pl.BlockSpec((dm_pad, tk_eff), lambda i, k: (0, k)),  # W1 cols
                pl.BlockSpec((1, tk_eff), lambda i, k: (0, k)),       # b1
                pl.BlockSpec((tk_eff, dm_pad), lambda i, k: (k, 0)),  # W2 rows
                pl.BlockSpec((1, dm_pad), lambda i, k: (0, 0)),       # b2
            ],
            out_specs=pl.BlockSpec((tm, dm_pad), lambda i, k: (i, 0)),
            scratch_shapes=([pltpu.VMEM((tm, dm_pad), jnp.float32)]
                            if use_scratch else []),
        ),
        compiler_params=pltpu.CompilerParams(
            dimension_semantics=("parallel", "arbitrary"),
            vmem_limit_bytes=vmem_limit,
        ),
    )(x2d, w1p, b1p, w2p, b2p)

    return out2d[:n, :d_model].reshape(x.shape)


def make_positionwise_ffn(w1, b1, w2, b2, *, compute_dtype=jnp.bfloat16,
                          block_rows=512, block_ff=512):
    """Prepares (casts + pads) the FFN weights once; returns x -> FFN(x)."""
    d_model = int(w1.shape[0])
    (w1p, b1p, w2p, b2p), tk = _prep_weights(w1, b1, w2, b2,
                                             compute_dtype, block_ff)
    vmem_cap = int(_tpu_vmem_capacity_bytes())
    min_row_tiles = int(_num_tensorcores_per_chip())   # feed both TCs on v7x

    def apply_fn(x):
        return _ffn_core(x, w1p, b1p, w2p, b2p,
                         d_model=d_model, tk=int(tk),
                         block_rows=int(block_rows),
                         min_row_tiles=min_row_tiles,
                         vmem_cap=vmem_cap)

    return apply_fn


def positionwise_ffn(x, w1, b1, w2, b2, *, compute_dtype=jnp.bfloat16,
                     block_rows=512, block_ff=512):
    """Convenience one-shot entry point (prep happens per call)."""
    return make_positionwise_ffn(w1, b1, w2, b2, compute_dtype=compute_dtype,
                                 block_rows=block_rows, block_ff=block_ff)(x)


def reference_ffn(x, w1, b1, w2, b2):
    h = jnp.maximum(jnp.einsum("bsd,df->bsf", x, w1) + b1, 0.0)
    return jnp.einsum("bsf,fd->bsd", h, w2) + b2


if __name__ == "__main__":
    # Small shapes consistent with the module: batch=2, seq=8, d_model=32, d_ff=64
    batch, seq, d_model, d_ff = 2, 8, 32, 64

    key = jax.random.PRNGKey(0)
    kx, kw1, kb1, kw2, kb2, kw1b, kw2b = jax.random.split(key, 7)

    x = jax.random.normal(kx, (batch, seq, d_model), dtype=jnp.float32)

    # Deterministic parameter init (mimicking nn.Linear's uniform fan-in scaling).
    bound1 = 1.0 / (d_model ** 0.5)
    bound2 = 1.0 / (d_ff ** 0.5)
    w1 = jax.random.uniform(kw1, (d_model, d_ff), jnp.float32, -bound1, bound1)
    b1 = jax.random.uniform(kb1, (d_ff,), jnp.float32, -bound1, bound1)
    w2 = jax.random.uniform(kw2, (d_ff, d_model), jnp.float32, -bound2, bound2)
    b2 = jax.random.uniform(kb2, (d_model,), jnp.float32, -bound2, bound2)

    ref = reference_ffn(x, w1, b1, w2, b2)

    # 1) Production path: bf16 MXU compute, f32 accumulation, pre-prepped weights.
    ffn_bf16 = make_positionwise_ffn(w1, b1, w2, b2)            # default bf16
    out_bf16 = jax.block_until_ready(ffn_bf16(x))
    assert out_bf16.shape == (batch, seq, d_model)
    assert jnp.allclose(out_bf16, ref, atol=5e-2, rtol=5e-2), "bf16 mismatch"

    # 2) Exact-check path: f32 compute matches the reference to 1e-5.
    ffn_f32 = make_positionwise_ffn(w1, b1, w2, b2, compute_dtype=jnp.float32)
    out_f32 = jax.block_until_ready(ffn_f32(x))
    assert jnp.allclose(out_f32, ref, atol=1e-5, rtol=1e-5), "f32 mismatch"

    # 3) Ragged row count: exercises the balanced/padded row-tile path.
    x_odd = jax.random.normal(kx, (3, 5, d_model), dtype=jnp.float32)
    ref_odd = reference_ffn(x_odd, w1, b1, w2, b2)
    out_odd = jax.block_until_ready(ffn_f32(x_odd))
    assert out_odd.shape == (3, 5, d_model)
    assert jnp.allclose(out_odd, ref_odd, atol=1e-5, rtol=1e-5), "ragged mismatch"

    # 4) Multi-step d_ff reduction (grid[1] > 1): exercises the resident-output
    #    accumulator (f32 out, no scratch) and the scratch accumulator (bf16 out).
    d_ff_big = 256
    bound2b = 1.0 / (d_ff_big ** 0.5)
    w1b = jax.random.uniform(kw1b, (d_model, d_ff_big), jnp.float32, -bound1, bound1)
    b1b = jax.random.uniform(kb1, (d_ff_big,), jnp.float32, -bound1, bound1)
    w2b = jax.random.uniform(kw2b, (d_ff_big, d_model), jnp.float32, -bound2b, bound2b)
    b2b = jax.random.uniform(kb2, (d_model,), jnp.float32, -bound2b, bound2b)
    ref_big = reference_ffn(x, w1b, b1b, w2b, b2b)

    ffn_big_f32 = make_positionwise_ffn(w1b, b1b, w2b, b2b,
                                        compute_dtype=jnp.float32, block_ff=128)
    out_big = jax.block_until_ready(ffn_big_f32(x))
    assert jnp.allclose(out_big, ref_big, atol=1e-5, rtol=1e-5), "multi-k mismatch"

    ffn_big_bf16 = make_positionwise_ffn(w1b, b1b, w2b, b2b, block_ff=128)
    out_big_bf = jax.block_until_ready(ffn_big_bf16(x.astype(jnp.bfloat16)))
    assert out_big_bf.dtype == jnp.bfloat16
    assert jnp.allclose(out_big_bf.astype(jnp.float32), ref_big,
                        atol=5e-2, rtol=5e-2), "multi-k bf16 mismatch"

    print("KERNEL_OK")
</pallas_src>

<mosaic_0001>
module attributes {stable_mosaic.version = 11 : i64} {
  func.func @_ffn_kernel(%arg0: i32, %arg1: i32, %arg2: memref<16x128xbf16, #tpu.memory_space<vmem>>, %arg3: memref<128x128xbf16, #tpu.memory_space<vmem>>, %arg4: memref<1x128xf32, #tpu.memory_space<vmem>>, %arg5: memref<128x128xbf16, #tpu.memory_space<vmem>>, %arg6: memref<1x128xf32, #tpu.memory_space<vmem>>, %arg7: memref<16x128xf32, #tpu.memory_space<vmem>>) attributes {dimension_semantics = [#tpu.dimension_semantics<parallel>, #tpu.dimension_semantics<arbitrary>], iteration_bounds = array<i64: 1, 1>, scalar_prefetch = 0 : i64, scratch_operands = 0 : i64, tpu.core_type = #tpu.core_type<tc>, window_params = [{transform_indices = @transform_0, window_bounds = array<i64: 16, 128>}, {transform_indices = @transform_1, window_bounds = array<i64: 128, 128>}, {transform_indices = @transform_2, window_bounds = array<i64: 1, 128>}, {transform_indices = @transform_3, window_bounds = array<i64: 128, 128>}, {pipeline_mode = #tpu.pipeline_mode<synchronous>, transform_indices = @transform_4, window_bounds = array<i64: 1, 128>}, {transform_indices = @transform_5, window_bounds = array<i64: 16, 128>}]} {
    %c0 = arith.constant 0 : index
    %c0_0 = arith.constant 0 : index
    %0 = vector.load %arg2[%c0, %c0_0] : memref<16x128xbf16, #tpu.memory_space<vmem>>, vector<16x128xbf16>
    %c0_1 = arith.constant 0 : index
    %c0_2 = arith.constant 0 : index
    %1 = vector.load %arg3[%c0_1, %c0_2] : memref<128x128xbf16, #tpu.memory_space<vmem>>, vector<128x128xbf16>
    %cst = arith.constant dense<0.000000e+00> : vector<16x128xf32>
    %2 = tpu.matmul %0, %1, %cst {dimension_numbers = #tpu.dot_dimension_numbers<[1], [0], [0], [1], [0, 0, 1, 1], [], []>} : vector<16x128xbf16>, vector<128x128xbf16>, vector<16x128xf32> -> vector<16x128xf32>
    %c0_3 = arith.constant 0 : index
    %c0_4 = arith.constant 0 : index
    %3 = vector.load %arg4[%c0_3, %c0_4] : memref<1x128xf32, #tpu.memory_space<vmem>>, vector<1x128xf32>
    %4 = vector.broadcast %3 : vector<1x128xf32> to vector<16x128xf32>
    %5 = arith.addf %2, %4 : vector<16x128xf32>
    %cst_5 = arith.constant 0.000000e+00 : f32
    %6 = vector.broadcast %cst_5 : f32 to vector<16x128xf32>
    %7 = arith.maximumf %5, %6 : vector<16x128xf32>
    %8 = arith.truncf %7 : vector<16x128xf32> to vector<16x128xbf16>
    %c0_6 = arith.constant 0 : index
    %c0_7 = arith.constant 0 : index
    %9 = vector.load %arg5[%c0_6, %c0_7] : memref<128x128xbf16, #tpu.memory_space<vmem>>, vector<128x128xbf16>
    %cst_8 = arith.constant dense<0.000000e+00> : vector<16x128xf32>
    %10 = tpu.matmul %8, %9, %cst_8 {dimension_numbers = #tpu.dot_dimension_numbers<[1], [0], [0], [1], [0, 0, 1, 1], [], []>} : vector<16x128xbf16>, vector<128x128xbf16>, vector<16x128xf32> -> vector<16x128xf32>
    %c0_9 = arith.constant 0 : index
    %c0_10 = arith.constant 0 : index
    %11 = vector.load %arg6[%c0_9, %c0_10] : memref<1x128xf32, #tpu.memory_space<vmem>>, vector<1x128xf32>
    %12 = vector.broadcast %11 : vector<1x128xf32> to vector<16x128xf32>
    %13 = arith.addf %10, %12 : vector<16x128xf32>
    %c0_11 = arith.constant 0 : index
    %c0_12 = arith.constant 0 : index
    %14 = vector.load %arg7[%c0_11, %c0_12] : memref<16x128xf32, #tpu.memory_space<vmem>>, vector<16x128xf32>
    tpu.vector_store %arg7[%c0_11, %c0_12], %13 {strides = array<i32>} : memref<16x128xf32, #tpu.memory_space<vmem>>, vector<16x128xf32>,
    return
  }
  func.func @transform_0(%arg0: i32, %arg1: i32) -> (i32, i32) {
    %c0_i32 = arith.constant 0 : i32
    %c0_i32_0 = arith.constant 0 : i32
    return %arg0, %c0_i32 : i32, i32
  }
  func.func @transform_1(%arg0: i32, %arg1: i32) -> (i32, i32) {
    %c0_i32 = arith.constant 0 : i32
    %c0_i32_0 = arith.constant 0 : i32
    return %c0_i32, %arg1 : i32, i32
  }
  func.func @transform_2(%arg0: i32, %arg1: i32) -> (i32, i32) {
    %c0_i32 = arith.constant 0 : i32
    %c0_i32_0 = arith.constant 0 : i32
    return %c0_i32, %arg1 : i32, i32
  }
  func.func @transform_3(%arg0: i32, %arg1: i32) -> (i32, i32) {
    %c0_i32 = arith.constant 0 : i32
    %c0_i32_0 = arith.constant 0 : i32
    return %arg1, %c0_i32 : i32, i32
  }
  func.func @transform_4(%arg0: i32, %arg1: i32) -> (i32, i32) {
    %c0_i32 = arith.constant 0 : i32
    %c0_i32_0 = arith.constant 0 : i32
    %c0_i32_1 = arith.constant 0 : i32
    return %c0_i32, %c0_i32_0 : i32, i32
  }
  func.func @transform_5(%arg0: i32, %arg1: i32) -> (i32, i32) {
    %c0_i32 = arith.constant 0 : i32
    %c0_i32_0 = arith.constant 0 : i32
    return %arg0, %c0_i32 : i32, i32
  }
}

</mosaic_0001>

<bundles_post_ra>
// kernel: _ffn_core.1
= control target key start
LH: loop header
LB: loop body
LE: loop exit
PB: predicated region body
PF: predicated region fallthrough
CT: control target
= control target key end

     0   :  { %10 = vsyncpa [#allocation3], 0  ;;  %s515_s0 = inlined_call_operand.vmem [shape: bf16[16,128], index: 0, kind: input, shape index: {}]   ;;  %s516_s1 = inlined_call_operand.hbm [shape: bf16[128,128], index: 1, kind: input, shape index: {}]   ;;  %s517_s2 = inlined_call_operand.vmem [shape: f32[1,128], index: 2, kind: input, shape index: {}]   ;;  %s518_s3 = inlined_call_operand.hbm [shape: bf16[128,128], index: 3, kind: input, shape index: {}]   ;;  %s519_s4 = inlined_call_operand.vmem [shape: f32[1,128], index: 4, kind: input, shape index: {}]   ;;  %s520_s5 = inlined_call_operand.vmem [shape: f32[16,128], index: 5, kind: output, shape index: {}]  }
   0x1   :  { %11 = vsyncpa [#allocation5], 0  ;;  %s440_s18 = smov [#allocation2]   ;;  %s392_s22 = scalar_lea.hbm %s516_s1, 1024 }
   0x2   :  { %s19_s19 = sshll.u32 %s440_s18, 4  ;;  %p393_p0 = scmp.ne.s32.totalorder %s516_s1, %s392_s22  ;;  %s20_s19 = int_to_ptr.vmem [resolvable:$true] %s19_s19 }
   0x3   :  { %p396_p1 = scmp.lt.u32.totalorder %s392_s22, %s516_s1 }
   0x5   :  { %p398_p2 = pnand %p396_p1, %p393_p0 }
   0x7   :  { %401 = shalt.err (!%p398_p2)
}
   0x8   :  { %s402_s27 = scalar_lea.vmem %s20_s19, 1024  ;;  %p407_p4 = scmp.lt.s32.totalorder %s20_s19, %s20_s19 }
   0x9   :  { %p403_p3 = scmp.ne.s32.totalorder %s20_s19, %s402_s27  ;;  %p408_p5 = scmp.lt.s32.totalorder %s402_s27, %s402_s27 }
   0xb   :  { %p409_p6 = por %p408_p5, %p407_p4 }
   0xd   :  { %p410_p7 = pnand %p409_p6, %p403_p3 }
   0xf   :  { %413 = shalt.err (!%p410_p7)
}
  0x10   :  { %s441_s28 = smov 64   ;;  %s442_s29 = smov 4  }
  0x11   :  { %25 = dma.hbm_to_vmem [thread:$0]  %s516_s1, 1024, %s20_s19, [#allocation3], %s441_s28, %s441_s28, %s442_s29  }
  0x12   :  { %s443_s7 = smov [#allocation4]   ;;  %s414_s11 = scalar_lea.hbm %s518_s3, 1024 }
  0x13   :  { %s33_s8 = sshll.u32 %s443_s7, 4  ;;  %p415_p8 = scmp.ne.s32.totalorder %s518_s3, %s414_s11  ;;  %s34_s8 = int_to_ptr.vmem [resolvable:$true] %s33_s8 }
  0x14   :  { %p418_p9 = scmp.lt.u32.totalorder %s414_s11, %s518_s3 }
  0x16   :  { %p420_p10 = pnand %p418_p9, %p415_p8 }
  0x18   :  { %423 = shalt.err (!%p420_p10)
}
  0x19   :  { %s424_s16 = scalar_lea.vmem %s34_s8, 1024  ;;  %p429_p12 = scmp.lt.s32.totalorder %s34_s8, %s34_s8 }
  0x1a   :  { %p425_p11 = scmp.ne.s32.totalorder %s34_s8, %s424_s16  ;;  %p430_p13 = scmp.lt.s32.totalorder %s424_s16, %s424_s16 }
  0x1c   :  { %p431_p0 = por %p430_p13, %p429_p12 }
  0x1e   :  { %p432_p1 = pnand %p431_p0, %p425_p11 }
  0x20   :  { %435 = shalt.err (!%p432_p1)
}
  0x21   :  { %39 = dma.hbm_to_vmem [thread:$0]  %s518_s3, 1024, %s34_s8, [#allocation5], %s441_s28, %s441_s28, %s442_s29  }
  0x22   :  { %436 = dma.done.wait [#allocation3], 1024  }
  0x23   :  { %437 = vsyncadd [#allocation3], 4294966272 }
  0x24   :  { %438 = dma.done.wait [#allocation5], 1024  }
  0x25   :  { %439 = vsyncadd [#allocation5], 4294966272  ;;  %v444_v0 = vmov 0.0   ;;  %vm445_vm0 = vmmov 0   ;;  %v375_v1 = vld [vmem:[#allocation2] sm:$0xff]   ;;  %v376_v2 = vld [vmem:[#allocation2 + $0x8] sm:$0xff]  }
  0x26   :  { %329 = vmatprep.subr.bf16.mxu0 %v444_v0  ;;  %345 = vmatprep.mubr.msk.bf16.mxu0 %vm445_vm0, %v444_v0  ;;  %v377_v3 = vld [vmem:[#allocation2 + $0x10] sm:$0xff]   ;;  %v384_v4 = vld [vmem:[#allocation4] sm:$0xff]   ;;  %v378_v5 = vld [vmem:[#allocation2 + $0x18] sm:$0xff]  }
  0x27   :  { %349 = vmatprep.subr.bf16.mxu1 %v444_v0  ;;  %365 = vmatprep.mubr.msk.bf16.mxu1 %vm445_vm0, %v444_v0  ;;  %v385_v6 = vld [vmem:[#allocation4 + $0x8] sm:$0xff]   ;;  %v379_v7 = vld [vmem:[#allocation2 + $0x20] sm:$0xff]   ;;  %v386_v8 = vld [vmem:[#allocation4 + $0x10] sm:$0xff]  }
  0x28   :  { %330 = vmatpush3.bf16.msra.mxu0 %v375_v1  ;;  %350 = vmatpush3.bf16.msra.mxu1 %v384_v4  ;;  %v380_v9 = vld [vmem:[#allocation2 + $0x28] sm:$0xff]   ;;  %v387_v10 = vld [vmem:[#allocation4 + $0x18] sm:$0xff]   ;;  %v381_v11 = vld [vmem:[#allocation2 + $0x30] sm:$0xff]  }
  0x29   :  { %331 = vmatprep.subr.bf16.mxu0 %v444_v0  ;;  %351 = vmatprep.subr.bf16.mxu1 %v444_v0  ;;  %v388_v12 = vld [vmem:[#allocation4 + $0x20] sm:$0xff]   ;;  %v382_v13 = vld [vmem:[#allocation2 + $0x38] sm:$0xff]   ;;  %v389_v14 = vld [vmem:[#allocation4 + $0x28] sm:$0xff]  }
  0x2a   :  { %v383_v15 = vld [vmem:[%s515_s0] sm:$0xff]   ;;  %v390_v16 = vld [vmem:[#allocation4 + $0x30] sm:$0xff]   ;;  %v391_v17 = vld [vmem:[#allocation4 + $0x38] sm:$0xff]  }
  0x2b   :  { %v292_v18 = vld [vmem:[%s517_s2] ss:$0 sm:$0xff] }
  0x2c   :  { %332 = vmatpush3.bf16.msra.mxu0 %v376_v2  ;;  %352 = vmatpush3.bf16.msra.mxu1 %v385_v6  ;;  %v302_v28 = vld [vmem:[%s519_s4] ss:$0 sm:$0xff] }
  0x2d   :  { %333 = vmatprep.subr.bf16.mxu0 %v444_v0  ;;  %353 = vmatprep.subr.bf16.mxu1 %v444_v0 }
  0x30   :  { %334 = vmatpush3.bf16.msra.mxu0 %v377_v3  ;;  %354 = vmatpush3.bf16.msra.mxu1 %v386_v8 }
  0x31   :  { %335 = vmatprep.subr.bf16.mxu0 %v444_v0  ;;  %355 = vmatprep.subr.bf16.mxu1 %v444_v0 }
  0x34   :  { %336 = vmatpush3.bf16.msra.mxu0 %v378_v5  ;;  %356 = vmatpush3.bf16.msra.mxu1 %v387_v10 }
  0x35   :  { %337 = vmatprep.subr.bf16.mxu0 %v444_v0  ;;  %357 = vmatprep.subr.bf16.mxu1 %v444_v0 }
  0x38   :  { %338 = vmatpush3.bf16.msra.mxu0 %v379_v7  ;;  %358 = vmatpush3.bf16.msra.mxu1 %v388_v12 }
  0x39   :  { %339 = vmatprep.subr.bf16.mxu0 %v444_v0  ;;  %359 = vmatprep.subr.bf16.mxu1 %v444_v0 }
  0x3c   :  { %340 = vmatpush3.bf16.msra.mxu0 %v380_v9  ;;  %360 = vmatpush3.bf16.msra.mxu1 %v389_v14 }
  0x3d   :  { %341 = vmatprep.subr.bf16.mxu0 %v444_v0  ;;  %361 = vmatprep.subr.bf16.mxu1 %v444_v0 }
  0x40   :  { %342 = vmatpush3.bf16.msra.mxu0 %v381_v11  ;;  %362 = vmatpush3.bf16.msra.mxu1 %v390_v16 }
  0x41   :  { %343 = vmatprep.subr.bf16.mxu0 %v444_v0  ;;  %363 = vmatprep.subr.bf16.mxu1 %v444_v0 }
  0x44   :  { %344 = vmatpush3.bf16.msra.mxu0 %v382_v13  ;;  %364 = vmatpush3.bf16.msra.mxu1 %v391_v17 }
  0x47   :  { %346 = vmatmul.mubr.bf16.vlgmr.msra.gmra.mrb[0].mxu0 %v383_v15 }
 0x11a   :  { %v162_v19 = vpop.f32.mrb[0].mxu0 }
 0x11b   :  { %v163_v20 = vadd.f32 %v292_v18, %v162_v19  ;;  %v347_v21 = vpop.f32.mrb[1].mxu0 }
 0x11c   :  { %v165_v22 = vpop.f32.mrb[2].mxu0 }
 0x11d   :  { %v166_v23 = vadd.f32 %v292_v18, %v165_v22  ;;  %v348_v24 = vpop.f32.mrb[3].mxu0  ;;  %v169_v25 = vmax.f32 %v163_v20, 0.0 }
 0x11f   :  { %v170_v26 = vmax.f32 %v166_v23, 0.0 }
 0x121   :  { %v171_v27 = vpack.c.bf16 %v170_v26, %v169_v25 }
 0x123   :  { %366 = vmatmul.mubr.bf16.vlgmr.msra.gmra.mrb[0].mxu1 %v171_v27 }
 0x1f6   :  { %v277_v29 = vpop.f32.mrb[0].mxu1 }
 0x1f7   :  { %v278_v30 = vadd.f32 %v302_v28, %v277_v29  ;;  %v367_v31 = vpop.f32.mrb[1].mxu1 }
 0x1f8   :  { %v280_v32 = vpop.f32.mrb[2].mxu1 }
 0x1f9   :  { %284 = vst [vmem:[%s520_s5] sm:$0xff] %v278_v30  ;;  %v281_v33 = vadd.f32 %v302_v28, %v280_v32  ;;  %v368_v34 = vpop.f32.mrb[3].mxu1 }
 0x1fb   :  { %285 = vst [vmem:[%s520_s5 + $0x8] sm:$0xff] %v281_v33 }
 0x1fc   :  { %290 = vsyncpa [#allocation3], 1 }
 0x1fd   :  { %291 = vsyncpa [#allocation5], 1 }

</bundles_post_ra>
